<compile_context>
chip_gen: v7x
topology: tpu7x:2x2x1
jax: 0.10.0
libtpu: 0.0.40
codegen_flags: <defaults>
</compile_context>

<pallas_src>
import functools

import jax
import jax.numpy as jnp
from jax.experimental import pallas as pl
from jax.experimental.pallas import tpu as pltpu


def graph_layer_kernel(g_ref, h_ref, w_out_ref, w_in_ref, bias_ref, o_ref,
                       flat_scr, grid3_scr, *, num_fields, embedding_dim):
    F = num_fields
    D = embedding_dim

    # (1) Per-field "out" projection as one lane-dense MXU matmul:
    #     h_out_flat[b, f*D+i] = sum_j h_flat[b, f*D+j] * W_out[f, i, j]
    h_out_flat = jnp.dot(h_ref[...], w_out_ref[...],
                         preferred_element_type=jnp.float32)        # (BB, F*D)

    # (2) flat -> (BB, F, D) via VMEM scratch (static ref slices only).
    flat_scr[...] = h_out_flat
    for f in range(F):
        grid3_scr[:, f, :] = flat_scr[:, f * D:(f + 1) * D]

    # (3) Graph aggregation: batched (F,F) @ (F,D) on the MXU.
    aggr = jnp.einsum("bik,bkd->bid", g_ref[...], grid3_scr[...],
                      preferred_element_type=jnp.float32)           # (BB, F, D)

    # (4) (BB, F, D) -> flat again.
    grid3_scr[...] = aggr
    for f in range(F):
        flat_scr[:, f * D:(f + 1) * D] = grid3_scr[:, f, :]

    # (5) Per-field "in" projection (second 256-wide MXU matmul) + bias,
    #     with a lane-dense (BB, F*D) output store.
    a_flat = jnp.dot(flat_scr[...], w_in_ref[...],
                     preferred_element_type=jnp.float32) + bias_ref[...]
    o_ref[...] = a_flat.astype(o_ref.dtype)


def _block_diag_rhs(w):
    """(F, D, D) per-field weights -> (F*D, F*D) right-multiply operand M with
    (x_flat @ M)[b, f*D+i] = sum_j x_flat[b, f*D+j] * w[f, i, j]."""
    F, D, _ = w.shape
    eye = jnp.eye(F, dtype=w.dtype)
    m = jnp.einsum("gf,fij->gjfi", eye, w)           # index order [g, j, f, i]
    return m.reshape(F * D, F * D)


def graph_layer(g, h, w_in, w_out, bias_p, *, batch_block=None):
    B, F, D = h.shape
    assert g.shape == (B, F, F)
    assert w_in.shape == (F, D, D) and w_out.shape == (F, D, D)
    assert bias_p.shape == (D,)

    FD = F * D
    bb = B if batch_block is None else batch_block
    assert B % bb == 0, "batch_block must divide the batch size"
    n_blocks = B // bb

    # Lane-dense operands prepared once in the wrapper.
    h_flat = h.reshape(B, FD)                        # (B, F*D)
    w_out_bd = _block_diag_rhs(w_out)                # (F*D, F*D)
    w_in_bd = _block_diag_rhs(w_in)                  # (F*D, F*D)
    bias_flat = jnp.tile(bias_p, F).reshape(1, FD)   # bias_flat[0, f*D+i] = bias[i]

    kernel = functools.partial(graph_layer_kernel,
                               num_fields=F, embedding_dim=D)

    out_flat = pl.pallas_call(
        kernel,
        out_shape=jax.ShapeDtypeStruct((B, FD), h.dtype),
        grid=(n_blocks,),
        in_specs=[
            pl.BlockSpec((bb, F, F), lambda i: (i, 0, 0)),   # g
            pl.BlockSpec((bb, FD), lambda i: (i, 0)),        # h (flattened)
            pl.BlockSpec((FD, FD), lambda i: (0, 0)),        # block-diag W_out
            pl.BlockSpec((FD, FD), lambda i: (0, 0)),        # block-diag W_in
            pl.BlockSpec((1, FD), lambda i: (0, 0)),         # tiled bias
        ],
        out_specs=pl.BlockSpec((bb, FD), lambda i: (i, 0)),
        scratch_shapes=[
            pltpu.VMEM((bb, FD), jnp.float32),               # flat scratch
            pltpu.VMEM((bb, F, D), jnp.float32),             # (BB, F, D) scratch
        ],
        # Parallel batch axis: no-op at one step, shards across the two
        # TensorCores on v7x when the batch is blocked into multiple steps.
        compiler_params=pltpu.CompilerParams(
            dimension_semantics=("parallel",)),
        # NOTE: at much larger F*D the resident block-diag weights would need a
        # vmem_limit_bytes bump / F-tiling (v7x has only 64 MiB physical VMEM).
    )(g, h_flat, w_out_bd, w_in_bd, bias_flat)

    return out_flat.reshape(B, F, D)


def reference(g, h, w_in, w_out, bias_p):
    h_out = jnp.einsum("fij,bfj->bfi", w_out, h)
    aggr = jnp.einsum("bik,bkd->bid", g, h_out)
    return jnp.einsum("fij,bfj->bfi", w_in, aggr) + bias_p


if __name__ == "__main__":
    B, F, D = 2, 8, 32   # batch, num_fields, embedding_dim

    key = jax.random.PRNGKey(0)
    k_g, k_h, k_wi, k_wo, k_b = jax.random.split(key, 5)

    # Deterministic parameter init (xavier_normal: std = sqrt(2/(D+D)))
    xavier_std = (2.0 / (D + D)) ** 0.5
    W_in = jax.random.normal(k_wi, (F, D, D), dtype=jnp.float32) * xavier_std
    W_out = jax.random.normal(k_wo, (F, D, D), dtype=jnp.float32) * xavier_std
    bias_p = 0.1 * jax.random.normal(k_b, (D,), dtype=jnp.float32)

    # Inputs: graph adjacency g (B, F, F) and field embeddings h (B, F, D)
    g = jax.nn.softmax(jax.random.normal(k_g, (B, F, F), dtype=jnp.float32), axis=-1)
    h = jax.random.normal(k_h, (B, F, D), dtype=jnp.float32)

    out = graph_layer(g, h, W_in, W_out, bias_p)
    out = jax.block_until_ready(out)

    ref = reference(g, h, W_in, W_out, bias_p)
    assert out.shape == (B, F, D)
    # Tolerance leaves headroom for MXU f32 matmul rounding vs the XLA einsums.
    assert jnp.allclose(out, ref, atol=1e-3, rtol=1e-3), "mismatch vs reference"

    print("KERNEL_OK")
</pallas_src>

<mosaic_0001>
module attributes {stable_mosaic.version = 11 : i64} {
  func.func @graph_layer_kernel(%arg0: i32, %arg1: memref<2x8x8xf32, #tpu.memory_space<vmem>>, %arg2: memref<2x256xf32, #tpu.memory_space<vmem>>, %arg3: memref<256x256xf32, #tpu.memory_space<vmem>>, %arg4: memref<256x256xf32, #tpu.memory_space<vmem>>, %arg5: memref<1x256xf32, #tpu.memory_space<vmem>>, %arg6: memref<2x256xf32, #tpu.memory_space<vmem>>, %arg7: memref<2x256xf32, #tpu.memory_space<vmem>>, %arg8: memref<2x8x32xf32, #tpu.memory_space<vmem>>) attributes {dimension_semantics = [#tpu.dimension_semantics<parallel>], iteration_bounds = array<i64: 1>, scalar_prefetch = 0 : i64, scratch_operands = 2 : i64, tpu.core_type = #tpu.core_type<tc>, window_params = [{transform_indices = @transform_0, window_bounds = array<i64: 2, 8, 8>}, {transform_indices = @transform_1, window_bounds = array<i64: 2, 256>}, {pipeline_mode = #tpu.pipeline_mode<synchronous>, transform_indices = @transform_2, window_bounds = array<i64: 256, 256>}, {pipeline_mode = #tpu.pipeline_mode<synchronous>, transform_indices = @transform_3, window_bounds = array<i64: 256, 256>}, {pipeline_mode = #tpu.pipeline_mode<synchronous>, transform_indices = @transform_4, window_bounds = array<i64: 1, 256>}, {transform_indices = @transform_5, window_bounds = array<i64: 2, 256>}]} {
    %c0 = arith.constant 0 : index
    %c0_0 = arith.constant 0 : index
    %0 = vector.load %arg2[%c0, %c0_0] : memref<2x256xf32, #tpu.memory_space<vmem>>, vector<2x256xf32>
    %c0_1 = arith.constant 0 : index
    %c0_2 = arith.constant 0 : index
    %1 = vector.load %arg3[%c0_1, %c0_2] : memref<256x256xf32, #tpu.memory_space<vmem>>, vector<256x256xf32>
    %cst = arith.constant dense<0.000000e+00> : vector<2x256xf32>
    %2 = tpu.matmul %0, %1, %cst {dimension_numbers = #tpu.dot_dimension_numbers<[1], [0], [0], [1], [0, 0, 1, 1], [], []>} : vector<2x256xf32>, vector<256x256xf32>, vector<2x256xf32> -> vector<2x256xf32>
    %c0_3 = arith.constant 0 : index
    %c0_4 = arith.constant 0 : index
    %3 = vector.load %arg7[%c0_3, %c0_4] : memref<2x256xf32, #tpu.memory_space<vmem>>, vector<2x256xf32>
    tpu.vector_store %arg7[%c0_3, %c0_4], %2 {strides = array<i32>} : memref<2x256xf32, #tpu.memory_space<vmem>>, vector<2x256xf32>,
    %c0_5 = arith.constant 0 : index
    %c0_6 = arith.constant 0 : index
    %4 = vector.load %arg7[%c0_5, %c0_6] : memref<2x256xf32, #tpu.memory_space<vmem>>, vector<2x32xf32>
    %c0_7 = arith.constant 0 : index
    %c0_8 = arith.constant 0 : index
    %c0_9 = arith.constant 0 : index
    %5 = vector.load %arg8[%c0_7, %c0_8, %c0_9] : memref<2x8x32xf32, #tpu.memory_space<vmem>>, vector<2x1x32xf32>
    %6 = vector.shape_cast %5 : vector<2x1x32xf32> to vector<2x32xf32>
    %7 = vector.shape_cast %4 : vector<2x32xf32> to vector<2x1x32xf32>
    tpu.vector_store %arg8[%c0_7, %c0_8, %c0_9], %7 {strides = array<i32>} : memref<2x8x32xf32, #tpu.memory_space<vmem>>, vector<2x1x32xf32>,
    %c0_10 = arith.constant 0 : index
    %c32 = arith.constant 32 : index
    %8 = vector.load %arg7[%c0_10, %c32] : memref<2x256xf32, #tpu.memory_space<vmem>>, vector<2x32xf32>
    %c0_11 = arith.constant 0 : index
    %c1 = arith.constant 1 : index
    %c0_12 = arith.constant 0 : index
    %9 = vector.load %arg8[%c0_11, %c1, %c0_12] : memref<2x8x32xf32, #tpu.memory_space<vmem>>, vector<2x1x32xf32>
    %10 = vector.shape_cast %9 : vector<2x1x32xf32> to vector<2x32xf32>
    %11 = vector.shape_cast %8 : vector<2x32xf32> to vector<2x1x32xf32>
    tpu.vector_store %arg8[%c0_11, %c1, %c0_12], %11 {strides = array<i32>} : memref<2x8x32xf32, #tpu.memory_space<vmem>>, vector<2x1x32xf32>,
    %c0_13 = arith.constant 0 : index
    %c64 = arith.constant 64 : index
    %12 = vector.load %arg7[%c0_13, %c64] : memref<2x256xf32, #tpu.memory_space<vmem>>, vector<2x32xf32>
    %c0_14 = arith.constant 0 : index
    %c2 = arith.constant 2 : index
    %c0_15 = arith.constant 0 : index
    %13 = vector.load %arg8[%c0_14, %c2, %c0_15] : memref<2x8x32xf32, #tpu.memory_space<vmem>>, vector<2x1x32xf32>
    %14 = vector.shape_cast %13 : vector<2x1x32xf32> to vector<2x32xf32>
    %15 = vector.shape_cast %12 : vector<2x32xf32> to vector<2x1x32xf32>
    tpu.vector_store %arg8[%c0_14, %c2, %c0_15], %15 {strides = array<i32>} : memref<2x8x32xf32, #tpu.memory_space<vmem>>, vector<2x1x32xf32>,
    %c0_16 = arith.constant 0 : index
    %c96 = arith.constant 96 : index
    %16 = vector.load %arg7[%c0_16, %c96] : memref<2x256xf32, #tpu.memory_space<vmem>>, vector<2x32xf32>
    %c0_17 = arith.constant 0 : index
    %c3 = arith.constant 3 : index
    %c0_18 = arith.constant 0 : index
    %17 = vector.load %arg8[%c0_17, %c3, %c0_18] : memref<2x8x32xf32, #tpu.memory_space<vmem>>, vector<2x1x32xf32>
    %18 = vector.shape_cast %17 : vector<2x1x32xf32> to vector<2x32xf32>
    %19 = vector.shape_cast %16 : vector<2x32xf32> to vector<2x1x32xf32>
    tpu.vector_store %arg8[%c0_17, %c3, %c0_18], %19 {strides = array<i32>} : memref<2x8x32xf32, #tpu.memory_space<vmem>>, vector<2x1x32xf32>,
    %c0_19 = arith.constant 0 : index
    %c128 = arith.constant 128 : index
    %20 = vector.load %arg7[%c0_19, %c128] : memref<2x256xf32, #tpu.memory_space<vmem>>, vector<2x32xf32>
    %c0_20 = arith.constant 0 : index
    %c4 = arith.constant 4 : index
    %c0_21 = arith.constant 0 : index
    %21 = vector.load %arg8[%c0_20, %c4, %c0_21] : memref<2x8x32xf32, #tpu.memory_space<vmem>>, vector<2x1x32xf32>
    %22 = vector.shape_cast %21 : vector<2x1x32xf32> to vector<2x32xf32>
    %23 = vector.shape_cast %20 : vector<2x32xf32> to vector<2x1x32xf32>
    tpu.vector_store %arg8[%c0_20, %c4, %c0_21], %23 {strides = array<i32>} : memref<2x8x32xf32, #tpu.memory_space<vmem>>, vector<2x1x32xf32>,
    %c0_22 = arith.constant 0 : index
    %c160 = arith.constant 160 : index
    %24 = vector.load %arg7[%c0_22, %c160] : memref<2x256xf32, #tpu.memory_space<vmem>>, vector<2x32xf32>
    %c0_23 = arith.constant 0 : index
    %c5 = arith.constant 5 : index
    %c0_24 = arith.constant 0 : index
    %25 = vector.load %arg8[%c0_23, %c5, %c0_24] : memref<2x8x32xf32, #tpu.memory_space<vmem>>, vector<2x1x32xf32>
    %26 = vector.shape_cast %25 : vector<2x1x32xf32> to vector<2x32xf32>
    %27 = vector.shape_cast %24 : vector<2x32xf32> to vector<2x1x32xf32>
    tpu.vector_store %arg8[%c0_23, %c5, %c0_24], %27 {strides = array<i32>} : memref<2x8x32xf32, #tpu.memory_space<vmem>>, vector<2x1x32xf32>,
    %c0_25 = arith.constant 0 : index
    %c192 = arith.constant 192 : index
    %28 = vector.load %arg7[%c0_25, %c192] : memref<2x256xf32, #tpu.memory_space<vmem>>, vector<2x32xf32>
    %c0_26 = arith.constant 0 : index
    %c6 = arith.constant 6 : index
    %c0_27 = arith.constant 0 : index
    %29 = vector.load %arg8[%c0_26, %c6, %c0_27] : memref<2x8x32xf32, #tpu.memory_space<vmem>>, vector<2x1x32xf32>
    %30 = vector.shape_cast %29 : vector<2x1x32xf32> to vector<2x32xf32>
    %31 = vector.shape_cast %28 : vector<2x32xf32> to vector<2x1x32xf32>
    tpu.vector_store %arg8[%c0_26, %c6, %c0_27], %31 {strides = array<i32>} : memref<2x8x32xf32, #tpu.memory_space<vmem>>, vector<2x1x32xf32>,
    %c0_28 = arith.constant 0 : index
    %c224 = arith.constant 224 : index
    %32 = vector.load %arg7[%c0_28, %c224] : memref<2x256xf32, #tpu.memory_space<vmem>>, vector<2x32xf32>
    %c0_29 = arith.constant 0 : index
    %c7 = arith.constant 7 : index
    %c0_30 = arith.constant 0 : index
    %33 = vector.load %arg8[%c0_29, %c7, %c0_30] : memref<2x8x32xf32, #tpu.memory_space<vmem>>, vector<2x1x32xf32>
    %34 = vector.shape_cast %33 : vector<2x1x32xf32> to vector<2x32xf32>
    %35 = vector.shape_cast %32 : vector<2x32xf32> to vector<2x1x32xf32>
    tpu.vector_store %arg8[%c0_29, %c7, %c0_30], %35 {strides = array<i32>} : memref<2x8x32xf32, #tpu.memory_space<vmem>>, vector<2x1x32xf32>,
    %c0_31 = arith.constant 0 : index
    %c0_32 = arith.constant 0 : index
    %c0_33 = arith.constant 0 : index
    %36 = vector.load %arg1[%c0_31, %c0_32, %c0_33] : memref<2x8x8xf32, #tpu.memory_space<vmem>>, vector<2x8x8xf32>
    %c0_34 = arith.constant 0 : index
    %c0_35 = arith.constant 0 : index
    %c0_36 = arith.constant 0 : index
    %37 = vector.load %arg8[%c0_34, %c0_35, %c0_36] : memref<2x8x32xf32, #tpu.memory_space<vmem>>, vector<2x8x32xf32>
    "tpu.trace_start"() <{level = 10 : i32, message = "bik,bkd->bid"}> : () -> ()
    %cst_37 = arith.constant dense<0.000000e+00> : vector<2x8x32xf32>
    %38 = tpu.matmul %36, %37, %cst_37 {dimension_numbers = #tpu.dot_dimension_numbers<[2], [1], [1], [2], [0, 0, 0, 1, 1, 2], [0], [0]>} : vector<2x8x8xf32>, vector<2x8x32xf32>, vector<2x8x32xf32> -> vector<2x8x32xf32>
    "tpu.trace_stop"() : () -> ()
    %c0_38 = arith.constant 0 : index
    %c0_39 = arith.constant 0 : index
    %c0_40 = arith.constant 0 : index
    %39 = vector.load %arg8[%c0_38, %c0_39, %c0_40] : memref<2x8x32xf32, #tpu.memory_space<vmem>>, vector<2x8x32xf32>
    tpu.vector_store %arg8[%c0_38, %c0_39, %c0_40], %38 {strides = array<i32>} : memref<2x8x32xf32, #tpu.memory_space<vmem>>, vector<2x8x32xf32>,
    %c0_41 = arith.constant 0 : index
    %c0_42 = arith.constant 0 : index
    %c0_43 = arith.constant 0 : index
    %40 = vector.load %arg8[%c0_41, %c0_42, %c0_43] : memref<2x8x32xf32, #tpu.memory_space<vmem>>, vector<2x1x32xf32>
    %41 = vector.shape_cast %40 : vector<2x1x32xf32> to vector<2x32xf32>
    %c0_44 = arith.constant 0 : index
    %c0_45 = arith.constant 0 : index
    %42 = vector.load %arg7[%c0_44, %c0_45] : memref<2x256xf32, #tpu.memory_space<vmem>>, vector<2x32xf32>
    tpu.vector_store %arg7[%c0_44, %c0_45], %41 {strides = array<i32>} : memref<2x256xf32, #tpu.memory_space<vmem>>, vector<2x32xf32>,
    %c0_46 = arith.constant 0 : index
    %c1_47 = arith.constant 1 : index
    %c0_48 = arith.constant 0 : index
    %43 = vector.load %arg8[%c0_46, %c1_47, %c0_48] : memref<2x8x32xf32, #tpu.memory_space<vmem>>, vector<2x1x32xf32>
    %44 = vector.shape_cast %43 : vector<2x1x32xf32> to vector<2x32xf32>
    %c0_49 = arith.constant 0 : index
    %c32_50 = arith.constant 32 : index
    %45 = vector.load %arg7[%c0_49, %c32_50] : memref<2x256xf32, #tpu.memory_space<vmem>>, vector<2x32xf32>
    tpu.vector_store %arg7[%c0_49, %c32_50], %44 {strides = array<i32>} : memref<2x256xf32, #tpu.memory_space<vmem>>, vector<2x32xf32>,
    %c0_51 = arith.constant 0 : index
    %c2_52 = arith.constant 2 : index
    %c0_53 = arith.constant 0 : index
    %46 = vector.load %arg8[%c0_51, %c2_52, %c0_53] : memref<2x8x32xf32, #tpu.memory_space<vmem>>, vector<2x1x32xf32>
    %47 = vector.shape_cast %46 : vector<2x1x32xf32> to vector<2x32xf32>
    %c0_54 = arith.constant 0 : index
    %c64_55 = arith.constant 64 : index
    %48 = vector.load %arg7[%c0_54, %c64_55] : memref<2x256xf32, #tpu.memory_space<vmem>>, vector<2x32xf32>
    tpu.vector_store %arg7[%c0_54, %c64_55], %47 {strides = array<i32>} : memref<2x256xf32, #tpu.memory_space<vmem>>, vector<2x32xf32>,
    %c0_56 = arith.constant 0 : index
    %c3_57 = arith.constant 3 : index
    %c0_58 = arith.constant 0 : index
    %49 = vector.load %arg8[%c0_56, %c3_57, %c0_58] : memref<2x8x32xf32, #tpu.memory_space<vmem>>, vector<2x1x32xf32>
    %50 = vector.shape_cast %49 : vector<2x1x32xf32> to vector<2x32xf32>
    %c0_59 = arith.constant 0 : index
    %c96_60 = arith.constant 96 : index
    %51 = vector.load %arg7[%c0_59, %c96_60] : memref<2x256xf32, #tpu.memory_space<vmem>>, vector<2x32xf32>
    tpu.vector_store %arg7[%c0_59, %c96_60], %50 {strides = array<i32>} : memref<2x256xf32, #tpu.memory_space<vmem>>, vector<2x32xf32>,
    %c0_61 = arith.constant 0 : index
    %c4_62 = arith.constant 4 : index
    %c0_63 = arith.constant 0 : index
    %52 = vector.load %arg8[%c0_61, %c4_62, %c0_63] : memref<2x8x32xf32, #tpu.memory_space<vmem>>, vector<2x1x32xf32>
    %53 = vector.shape_cast %52 : vector<2x1x32xf32> to vector<2x32xf32>
    %c0_64 = arith.constant 0 : index
    %c128_65 = arith.constant 128 : index
    %54 = vector.load %arg7[%c0_64, %c128_65] : memref<2x256xf32, #tpu.memory_space<vmem>>, vector<2x32xf32>
    tpu.vector_store %arg7[%c0_64, %c128_65], %53 {strides = array<i32>} : memref<2x256xf32, #tpu.memory_space<vmem>>, vector<2x32xf32>,
    %c0_66 = arith.constant 0 : index
    %c5_67 = arith.constant 5 : index
    %c0_68 = arith.constant 0 : index
    %55 = vector.load %arg8[%c0_66, %c5_67, %c0_68] : memref<2x8x32xf32, #tpu.memory_space<vmem>>, vector<2x1x32xf32>
    %56 = vector.shape_cast %55 : vector<2x1x32xf32> to vector<2x32xf32>
    %c0_69 = arith.constant 0 : index
    %c160_70 = arith.constant 160 : index
    %57 = vector.load %arg7[%c0_69, %c160_70] : memref<2x256xf32, #tpu.memory_space<vmem>>, vector<2x32xf32>
    tpu.vector_store %arg7[%c0_69, %c160_70], %56 {strides = array<i32>} : memref<2x256xf32, #tpu.memory_space<vmem>>, vector<2x32xf32>,
    %c0_71 = arith.constant 0 : index
    %c6_72 = arith.constant 6 : index
    %c0_73 = arith.constant 0 : index
    %58 = vector.load %arg8[%c0_71, %c6_72, %c0_73] : memref<2x8x32xf32, #tpu.memory_space<vmem>>, vector<2x1x32xf32>
    %59 = vector.shape_cast %58 : vector<2x1x32xf32> to vector<2x32xf32>
    %c0_74 = arith.constant 0 : index
    %c192_75 = arith.constant 192 : index
    %60 = vector.load %arg7[%c0_74, %c192_75] : memref<2x256xf32, #tpu.memory_space<vmem>>, vector<2x32xf32>
    tpu.vector_store %arg7[%c0_74, %c192_75], %59 {strides = array<i32>} : memref<2x256xf32, #tpu.memory_space<vmem>>, vector<2x32xf32>,
    %c0_76 = arith.constant 0 : index
    %c7_77 = arith.constant 7 : index
    %c0_78 = arith.constant 0 : index
    %61 = vector.load %arg8[%c0_76, %c7_77, %c0_78] : memref<2x8x32xf32, #tpu.memory_space<vmem>>, vector<2x1x32xf32>
    %62 = vector.shape_cast %61 : vector<2x1x32xf32> to vector<2x32xf32>
    %c0_79 = arith.constant 0 : index
    %c224_80 = arith.constant 224 : index
    %63 = vector.load %arg7[%c0_79, %c224_80] : memref<2x256xf32, #tpu.memory_space<vmem>>, vector<2x32xf32>
    tpu.vector_store %arg7[%c0_79, %c224_80], %62 {strides = array<i32>} : memref<2x256xf32, #tpu.memory_space<vmem>>, vector<2x32xf32>,
    %c0_81 = arith.constant 0 : index
    %c0_82 = arith.constant 0 : index
    %64 = vector.load %arg7[%c0_81, %c0_82] : memref<2x256xf32, #tpu.memory_space<vmem>>, vector<2x256xf32>
    %c0_83 = arith.constant 0 : index
    %c0_84 = arith.constant 0 : index
    %65 = vector.load %arg4[%c0_83, %c0_84] : memref<256x256xf32, #tpu.memory_space<vmem>>, vector<256x256xf32>
    %cst_85 = arith.constant dense<0.000000e+00> : vector<2x256xf32>
    %66 = tpu.matmul %64, %65, %cst_85 {dimension_numbers = #tpu.dot_dimension_numbers<[1], [0], [0], [1], [0, 0, 1, 1], [], []>} : vector<2x256xf32>, vector<256x256xf32>, vector<2x256xf32> -> vector<2x256xf32>
    %c0_86 = arith.constant 0 : index
    %c0_87 = arith.constant 0 : index
    %67 = vector.load %arg5[%c0_86, %c0_87] : memref<1x256xf32, #tpu.memory_space<vmem>>, vector<1x256xf32>
    %68 = vector.broadcast %67 : vector<1x256xf32> to vector<2x256xf32>
    %69 = arith.addf %66, %68 : vector<2x256xf32>
    %c0_88 = arith.constant 0 : index
    %c0_89 = arith.constant 0 : index
    %70 = vector.load %arg6[%c0_88, %c0_89] : memref<2x256xf32, #tpu.memory_space<vmem>>, vector<2x256xf32>
    tpu.vector_store %arg6[%c0_88, %c0_89], %69 {strides = array<i32>} : memref<2x256xf32, #tpu.memory_space<vmem>>, vector<2x256xf32>,
    return
  }
  func.func @transform_0(%arg0: i32) -> (i32, i32, i32) {
    %c0_i32 = arith.constant 0 : i32
    %c0_i32_0 = arith.constant 0 : i32
    %c0_i32_1 = arith.constant 0 : i32
    return %arg0, %c0_i32, %c0_i32_0 : i32, i32, i32
  }
  func.func @transform_1(%arg0: i32) -> (i32, i32) {
    %c0_i32 = arith.constant 0 : i32
    %c0_i32_0 = arith.constant 0 : i32
    return %arg0, %c0_i32 : i32, i32
  }
  func.func @transform_2(%arg0: i32) -> (i32, i32) {
    %c0_i32 = arith.constant 0 : i32
    %c0_i32_0 = arith.constant 0 : i32
    %c0_i32_1 = arith.constant 0 : i32
    return %c0_i32, %c0_i32_0 : i32, i32
  }
  func.func @transform_3(%arg0: i32) -> (i32, i32) {
    %c0_i32 = arith.constant 0 : i32
    %c0_i32_0 = arith.constant 0 : i32
    %c0_i32_1 = arith.constant 0 : i32
    return %c0_i32, %c0_i32_0 : i32, i32
  }
  func.func @transform_4(%arg0: i32) -> (i32, i32) {
    %c0_i32 = arith.constant 0 : i32
    %c0_i32_0 = arith.constant 0 : i32
    %c0_i32_1 = arith.constant 0 : i32
    return %c0_i32, %c0_i32_0 : i32, i32
  }
  func.func @transform_5(%arg0: i32) -> (i32, i32) {
    %c0_i32 = arith.constant 0 : i32
    %c0_i32_0 = arith.constant 0 : i32
    return %arg0, %c0_i32 : i32, i32
  }
}

</mosaic_0001>

<bundles_post_ra>
// kernel: tpu_custom_call.1
= control target key start
LH: loop header
LB: loop body
LE: loop exit
PB: predicated region body
PF: predicated region fallthrough
CT: control target
= control target key end

     0   :  { %10 = vsyncpa [#allocation5], 0  ;;  %s1500_s0 = inlined_call_operand.hbm [shape: f32[2,8,8], index: 0, kind: input, shape index: {}]   ;;  %s1501_s1 = inlined_call_operand.hbm [shape: f32[2,256], index: 1, kind: input, shape index: {}]   ;;  %s1502_s2 = inlined_call_operand.hbm [shape: f32[256,256], index: 2, kind: input, shape index: {}]   ;;  %s1503_s3 = inlined_call_operand.hbm [shape: f32[256,256], index: 3, kind: input, shape index: {}]   ;;  %s1504_s4 = inlined_call_operand.vmem [shape: f32[1,256], index: 4, kind: input, shape index: {}]   ;;  %s1505_s5 = inlined_call_operand.hbm [shape: f32[2,256], index: 5, kind: output, shape index: {}]  }
   0x1   :  { %11 = vsyncpa [#allocation8], 0 }
   0x2   :  { %12 = vsyncpa [#allocation11], 0 }
   0x3   :  { %13 = vsyncpa [#allocation6], 0  ;;  %s1302_s18 = smov [#allocation7]   ;;  %s1303_s20 = smov [#allocation4]  }
   0x4   :  { %s32_s19 = sshll.u32 %s1302_s18, 4  ;;  %s19_s21 = sshll.u32 %s1303_s20, 4  ;;  %s33_s19 = int_to_ptr.vmem [resolvable:$true] %s32_s19  ;;  %s1346_s21 = int_to_ptr.vmem [resolvable:$true] %s19_s21 }
   0x5   :  { %s1184_s24 = scalar_lea.hbm %s1501_s1, 64 }
   0x6   :  { %p1185_p0 = scmp.ne.s32.totalorder %s1501_s1, %s1184_s24  ;;  %p1188_p1 = scmp.lt.u32.totalorder %s1184_s24, %s1501_s1 }
   0x8   :  { %p1190_p2 = pnand %p1188_p1, %p1185_p0 }
   0xa   :  { %1193 = shalt.err (!%p1190_p2)
}
   0xb   :  { %s1194_s29 = scalar_lea.vmem %s33_s19, 64  ;;  %p1199_p4 = scmp.lt.s32.totalorder %s33_s19, %s33_s19 }
   0xc   :  { %p1195_p3 = scmp.ne.s32.totalorder %s33_s19, %s1194_s29  ;;  %p1200_p5 = scmp.lt.s32.totalorder %s1194_s29, %s1194_s29 }
   0xe   :  { %p1201_p6 = por %p1200_p5, %p1199_p4 }
  0x10   :  { %p1202_p7 = pnand %p1201_p6, %p1195_p3 }
  0x12   :  { %1205 = shalt.err (!%p1202_p7)
}
  0x13   :  { %35 = dma.hbm_to_vmem [thread:$0]  %s1501_s1, 64, %s33_s19, [#allocation8]  }
  0x14   :  { %s1206_s9 = scalar_lea.hbm %s1500_s0, 256 }
  0x15   :  { %p1207_p8 = scmp.ne.s32.totalorder %s1500_s0, %s1206_s9  ;;  %p1210_p9 = scmp.lt.u32.totalorder %s1206_s9, %s1500_s0 }
  0x17   :  { %p1212_p10 = pnand %p1210_p9, %p1207_p8 }
  0x19   :  { %1215 = shalt.err (!%p1212_p10)
}
  0x1a   :  { %s1216_s14 = scalar_lea.vmem %s1346_s21, 256  ;;  %p1221_p12 = scmp.lt.s32.totalorder %s1346_s21, %s1346_s21 }
  0x1b   :  { %p1217_p11 = scmp.ne.s32.totalorder %s1346_s21, %s1216_s14  ;;  %p1222_p13 = scmp.lt.s32.totalorder %s1216_s14, %s1216_s14 }
  0x1d   :  { %p1223_p0 = por %p1222_p13, %p1221_p12 }
  0x1f   :  { %p1224_p1 = pnand %p1223_p0, %p1217_p11 }
  0x21   :  { %1227 = shalt.err (!%p1224_p1)
}
  0x22   :  { %s1304_s1 = smov 128   ;;  %s1305_s15 = smov 8  }
  0x23   :  { %25 = dma.hbm_to_vmem [thread:$0]  %s1500_s0, 256, %s1346_s21, [#allocation5], %s1304_s1, %s1304_s1, %s1305_s15  }
  0x24   :  { %s1306_s18 = smov [#allocation9]   ;;  %s1228_s23 = scalar_lea.hbm %s1502_s2, 8192 }
  0x25   :  { %s41_s19 = sshll.u32 %s1306_s18, 4  ;;  %p1229_p2 = scmp.ne.s32.totalorder %s1502_s2, %s1228_s23  ;;  %s42_s19 = int_to_ptr.vmem [resolvable:$true] %s41_s19 }
  0x26   :  { %p1232_p3 = scmp.lt.u32.totalorder %s1228_s23, %s1502_s2 }
  0x28   :  { %p1234_p4 = pnand %p1232_p3, %p1229_p2 }
  0x2a   :  { %1237 = shalt.err (!%p1234_p4)
}
  0x2b   :  { %s1238_s28 = scalar_lea.vmem %s42_s19, 8192  ;;  %p1243_p6 = scmp.lt.s32.totalorder %s42_s19, %s42_s19 }
  0x2c   :  { %p1239_p5 = scmp.ne.s32.totalorder %s42_s19, %s1238_s28  ;;  %p1244_p7 = scmp.lt.s32.totalorder %s1238_s28, %s1238_s28 }
  0x2e   :  { %p1245_p8 = por %p1244_p7, %p1243_p6 }
  0x30   :  { %p1246_p9 = pnand %p1245_p8, %p1239_p5 }
  0x32   :  { %1249 = shalt.err (!%p1246_p9)
}
  0x33   :  { %s1307_s0 = smov 256   ;;  %s1308_s21 = smov 16  }
  0x34   :  { %47 = dma.hbm_to_vmem [thread:$0]  %s1502_s2, 8192, %s42_s19, [#allocation8], %s1307_s0, %s1307_s0, %s1308_s21  }
  0x35   :  { %s1309_s6 = smov [#allocation10]   ;;  %s1250_s10 = scalar_lea.hbm %s1503_s3, 8192 }
  0x36   :  { %s53_s7 = sshll.u32 %s1309_s6, 4  ;;  %p1251_p10 = scmp.ne.s32.totalorder %s1503_s3, %s1250_s10  ;;  %s54_s7 = int_to_ptr.vmem [resolvable:$true] %s53_s7 }
  0x37   :  { %p1254_p11 = scmp.lt.u32.totalorder %s1250_s10, %s1503_s3 }
  0x39   :  { %p1256_p12 = pnand %p1254_p11, %p1251_p10 }
  0x3b   :  { %1259 = shalt.err (!%p1256_p12)
}
  0x3c   :  { %s1260_s1 = scalar_lea.vmem %s54_s7, 8192  ;;  %p1265_p0 = scmp.lt.s32.totalorder %s54_s7, %s54_s7 }
  0x3d   :  { %p1261_p13 = scmp.ne.s32.totalorder %s54_s7, %s1260_s1  ;;  %p1266_p1 = scmp.lt.s32.totalorder %s1260_s1, %s1260_s1 }
  0x3f   :  { %p1267_p2 = por %p1266_p1, %p1265_p0 }
  0x41   :  { %p1268_p3 = pnand %p1267_p2, %p1261_p13 }
  0x43   :  { %1271 = shalt.err (!%p1268_p3)
}
  0x44   :  { %59 = dma.hbm_to_vmem [thread:$0]  %s1503_s3, 8192, %s54_s7, [#allocation11], %s1307_s0, %s1307_s0, %s1308_s21  }
  0x45   :  { %1294 = dma.done.wait [#allocation5], 256  }
  0x46   :  { %1295 = vsyncadd [#allocation5], 4294967040 }
  0x47   :  { %1296 = dma.done.wait [#allocation8], 8256  }
  0x48   :  { %1297 = vsyncadd [#allocation8], 4294959040 }
  0x49   :  { %1298 = dma.done.wait [#allocation11], 8192  }
  0x4a   :  { %1299 = vsyncadd [#allocation11], 4294959104  ;;  %v76_v0 = vld [vmem:[#allocation9 + $0x8] sm:$0xff]  ;;  %v78_v1 = vld [vmem:[#allocation9 + $0x18] sm:$0xff]  ;;  %vm245_vm0 = vcmask 253952   ;;  %s1310_s3 = smov 64  }
  0x4b   :  { %v75_v2 = vld [vmem:[#allocation9] sm:$0xff]  ;;  %v1042_v3 = vpack.c.bf16 %v78_v1, %v76_v0  ;;  %v77_v4 = vld [vmem:[#allocation9 + $0x10] sm:$0xff]  ;;  %v80_v5 = vld [vmem:[#allocation9 + $0x28] sm:$0xff]  ;;  %s1311_s16 = smov 96   ;;  %s1312_s17 = smov 32   ;;  %vm1314_vm1 = vmmov 0  }
  0x4c   :  { %v82_v6 = vld [vmem:[#allocation9 + $0x38] sm:$0xff]  ;;  %v1044_v7 = vpack.c.bf16 %v77_v4, %v75_v2  ;;  %v79_v9 = vld [vmem:[#allocation9 + $0x20] sm:$0xff]  ;;  %v81_v10 = vld [vmem:[#allocation9 + $0x30] sm:$0xff]  ;;  %vm422_vm2 = vcmask 64512   ;;  %vm569_vm3 = vcmask 261120   ;;  %vm595_vm4 = vcmask 1041409  }
  0x4d   :  { %v1046_v8 = vpack.c.bf16 %v82_v6, %v80_v5  ;;  %v84_v11 = vld [vmem:[#allocation9 + $0x48] sm:$0xff]  ;;  %1043 = vmatprep.subr.bf16.mxu0 %v1042_v3  ;;  %v86_v12 = vld [vmem:[#allocation9 + $0x58] sm:$0xff]  ;;  %v1048_v13 = vpack.c.bf16 %v81_v10, %v79_v9  ;;  %v83_v15 = vld [vmem:[#allocation9 + $0x40] sm:$0xff]  ;;  %vm597_vm5 = vcmask 1043459   ;;  %vm599_vm6 = vcmask 1045509   ;;  %s1315_s20 = smov [#allocation12]  }
  0x4e   :  { %1045 = vmatpush1.bf16.msra.mxu0 %v1044_v7  ;;  %v1050_v14 = vpack.c.bf16 %v86_v12, %v84_v11  ;;  %v85_v16 = vld [vmem:[#allocation9 + $0x50] sm:$0xff]  ;;  %v88_v17 = vld [vmem:[#allocation9 + $0x68] sm:$0xff]  ;;  %v90_v18 = vld [vmem:[#allocation9 + $0x78] sm:$0xff]  ;;  %vm601_vm7 = vcmask 1047559   ;;  %vm604_vm8 = vcmask 254976   ;;  %vm634_vm9 = vcmask 517376  }
  0x4f   :  { %1047 = vmatprep.subr.bf16.mxu0 %v1046_v8  ;;  %v1052_v19 = vpack.c.bf16 %v85_v16, %v83_v15  ;;  %v1054_v20 = vpack.c.bf16 %v90_v18, %v88_v17  ;;  %v87_v21 = vld [vmem:[#allocation9 + $0x60] sm:$0xff]  ;;  %v89_v22 = vld [vmem:[#allocation9 + $0x70] sm:$0xff]  ;;  %v92_v23 = vld [vmem:[#allocation9 + $0x88] sm:$0xff]  ;;  %vm664_vm10 = vcmask 779776   ;;  %vm694_vm11 = vcmask 1042176   ;;  %s987_s22 = sshll.u32 %s1315_s20, 4  ;;  %s988_s22 = int_to_ptr.vmem [resolvable:$true] %s987_s22 }
  0x50   :  { %v94_v24 = vld [vmem:[#allocation9 + $0x98] sm:$0xff]  ;;  %v1056_v25 = vpack.c.bf16 %v89_v22, %v87_v21  ;;  %v91_v27 = vld [vmem:[#allocation9 + $0x80] sm:$0xff]  ;;  %v93_v28 = vld [vmem:[#allocation9 + $0x90] sm:$0xff]  ;;  %s1272_s23 = scalar_lea.vmem %s988_s22, 64  ;;  %p1277_p5 = scmp.lt.s32.totalorder %s988_s22, %s988_s22 }
  0x51   :  { %v1058_v26 = vpack.c.bf16 %v94_v24, %v92_v23  ;;  %v96_v29 = vld [vmem:[#allocation9 + $0xa8] sm:$0xff]  ;;  %v98_v30 = vld [vmem:[#allocation9 + $0xb8] sm:$0xff]  ;;  %v1060_v31 = vpack.c.bf16 %v93_v28, %v91_v27  ;;  %v95_v33 = vld [vmem:[#allocation9 + $0xa0] sm:$0xff]  ;;  %p1273_p4 = scmp.ne.s32.totalorder %s988_s22, %s1272_s23  ;;  %p1278_p6 = scmp.lt.s32.totalorder %s1272_s23, %s1272_s23 }
  0x52   :  { %1049 = vmatpush1.bf16.msra.mxu0 %v1048_v13  ;;  %v1062_v32 = vpack.c.bf16 %v98_v30, %v96_v29  ;;  %v97_v34 = vld [vmem:[#allocation9 + $0xb0] sm:$0xff]  ;;  %v100_v35 = vld [vmem:[#allocation9 + $0xc8] sm:$0xff]  ;;  %v102_v36 = vld [vmem:[#allocation9 + $0xd8] sm:$0xff] }
  0x53   :  { %1051 = vmatprep.subr.bf16.mxu0 %v1050_v14  ;;  %v1064_v37 = vpack.c.bf16 %v97_v34, %v95_v33  ;;  %v1066_v38 = vpack.c.bf16 %v102_v36, %v100_v35  ;;  %v99_v39 = vld [vmem:[#allocation9 + $0xc0] sm:$0xff]  ;;  %v101_v40 = vld [vmem:[#allocation9 + $0xd0] sm:$0xff]  ;;  %v1401_v41 = vld.sshfl [vmem:[#allocation7] sm:$0x33 pattern:$0x76325410]  ;;  %v258_v35 = vlaneseq  ;;  %p1279_p7 = por %p1278_p6, %p1277_p5 }
  0x54   :  { %v104_v42 = vld [vmem:[#allocation9 + $0xe8] sm:$0xff]  ;;  %v106_v43 = vld [vmem:[#allocation9 + $0xf8] sm:$0xff]  ;;  %v147_v44 = vcombine.high %v1401_v41, %v1401_v41  ;;  %v1068_v45 = vpack.c.bf16 %v101_v40, %v99_v39  ;;  %v103_v47 = vld [vmem:[#allocation9 + $0xe0] sm:$0xff] }
  0x55   :  { %v1070_v46 = vpack.c.bf16 %v106_v43, %v104_v42  ;;  %v105_v48 = vld [vmem:[#allocation9 + $0xf0] sm:$0xff]  ;;  %v108_v49 = vld [vmem:[#allocation9 + $0x108] sm:$0xff]  ;;  %v110_v50 = vld [vmem:[#allocation9 + $0x118] sm:$0xff]  ;;  %p1280_p8 = pnand %p1279_p7, %p1273_p4 }
  0x56   :  { %1053 = vmatpush1.bf16.msra.mxu0 %v1052_v19  ;;  %214 = vmatprep.mubr.f32.mxu0 %v147_v44  ;;  %v1072_v51 = vpack.c.bf16 %v105_v48, %v103_v47  ;;  %v1074_v52 = vpack.c.bf16 %v110_v50, %v108_v49  ;;  %v107_v53 = vld [vmem:[#allocation9 + $0x100] sm:$0xff]  ;;  %v109_v54 = vld [vmem:[#allocation9 + $0x110] sm:$0xff]  ;;  %v112_v55 = vld [vmem:[#allocation9 + $0x128] sm:$0xff]  ;;  %v1313_v47 = vmov 0.0  }
  0x57   :  { %1055 = vmatprep.subr.bf16.mxu0 %v1054_v20  ;;  %v114_v56 = vld [vmem:[#allocation9 + $0x138] sm:$0xff]  ;;  %v1076_v57 = vpack.c.bf16 %v109_v54, %v107_v53  ;;  %v111_v59 = vld [vmem:[#allocation9 + $0x120] sm:$0xff]  ;;  %v113_v60 = vld [vmem:[#allocation9 + $0x130] sm:$0xff]  ;;  %1037 = vmatprep.subr.mxu1 %v1313_v47 }
  0x58   :  { %v1078_v58 = vpack.c.bf16 %v114_v56, %v112_v55  ;;  %v116_v61 = vld [vmem:[#allocation9 + $0x148] sm:$0xff]  ;;  %v118_v62 = vld [vmem:[#allocation9 + $0x158] sm:$0xff]  ;;  %v1080_v63 = vpack.c.bf16 %v113_v60, %v111_v59  ;;  %v115_v1 = vld [vmem:[#allocation9 + $0x140] sm:$0xff]  ;;  %1039 = vmatprep.mubr.msk.f32.mxu1 %vm1314_vm1, %v1313_v47 }
  0x59   :  { %v1082_v0 = vpack.c.bf16 %v118_v62, %v116_v61  ;;  %v117_v2 = vld [vmem:[#allocation9 + $0x150] sm:$0xff]  ;;  %v120_v3 = vld [vmem:[#allocation9 + $0x168] sm:$0xff]  ;;  %v122_v4 = vld [vmem:[#allocation9 + $0x178] sm:$0xff] }
  0x5a   :  { %1057 = vmatpush1.bf16.msra.mxu0 %v1056_v25  ;;  %v1084_v5 = vpack.c.bf16 %v117_v2, %v115_v1  ;;  %v1086_v6 = vpack.c.bf16 %v122_v4, %v120_v3  ;;  %v119_v7 = vld [vmem:[#allocation9 + $0x160] sm:$0xff]  ;;  %v121_v8 = vld [vmem:[#allocation9 + $0x170] sm:$0xff]  ;;  %v124_v9 = vld [vmem:[#allocation9 + $0x188] sm:$0xff] }
  0x5b   :  { %1059 = vmatprep.subr.bf16.mxu0 %v1058_v26  ;;  %v126_v10 = vld [vmem:[#allocation9 + $0x198] sm:$0xff]  ;;  %v1088_v11 = vpack.c.bf16 %v121_v8, %v119_v7  ;;  %v123_v13 = vld [vmem:[#allocation9 + $0x180] sm:$0xff]  ;;  %v125_v14 = vld [vmem:[#allocation9 + $0x190] sm:$0xff] }
  0x5c   :  { %v1090_v12 = vpack.c.bf16 %v126_v10, %v124_v9  ;;  %v128_v15 = vld [vmem:[#allocation9 + $0x1a8] sm:$0xff]  ;;  %v130_v16 = vld [vmem:[#allocation9 + $0x1b8] sm:$0xff]  ;;  %v1092_v17 = vpack.c.bf16 %v125_v14, %v123_v13  ;;  %v127_v19 = vld [vmem:[#allocation9 + $0x1a0] sm:$0xff] }
  0x5d   :  { %v1094_v18 = vpack.c.bf16 %v130_v16, %v128_v15  ;;  %v129_v20 = vld [vmem:[#allocation9 + $0x1b0] sm:$0xff]  ;;  %v132_v21 = vld [vmem:[#allocation9 + $0x1c8] sm:$0xff]  ;;  %v134_v22 = vld [vmem:[#allocation9 + $0x1d8] sm:$0xff] }
  0x5e   :  { %1061 = vmatpush1.bf16.msra.mxu0 %v1060_v31  ;;  %v1096_v23 = vpack.c.bf16 %v129_v20, %v127_v19  ;;  %v1098_v24 = vpack.c.bf16 %v134_v22, %v132_v21  ;;  %v131_v25 = vld [vmem:[#allocation9 + $0x1c0] sm:$0xff]  ;;  %v133_v26 = vld [vmem:[#allocation9 + $0x1d0] sm:$0xff]  ;;  %v136_v27 = vld [vmem:[#allocation9 + $0x1e8] sm:$0xff] }
  0x5f   :  { %1063 = vmatprep.subr.bf16.mxu0 %v1062_v32  ;;  %v138_v28 = vld [vmem:[#allocation9 + $0x1f8] sm:$0xff]  ;;  %v1100_v29 = vpack.c.bf16 %v133_v26, %v131_v25  ;;  %v135_v31 = vld [vmem:[#allocation9 + $0x1e0] sm:$0xff]  ;;  %v137_v32 = vld [vmem:[#allocation9 + $0x1f0] sm:$0xff] }
  0x60   :  { %v1102_v30 = vpack.c.bf16 %v138_v28, %v136_v27  ;;  %v1104_v33 = vpack.c.bf16 %v137_v32, %v135_v31  ;;  %v419_v61 = vld [vmem:[#allocation4 + $0x8] sm:$0xff]  ;;  %v812_v1 = vld [vmem:[#allocation10 + $0x8] sm:$0xff]  ;;  %v811_v3 = vld [vmem:[#allocation10] sm:$0xff] }
  0x61   :  { %v814_v2 = vld [vmem:[#allocation10 + $0x18] sm:$0xff]  ;;  %v815_v10 = vld [vmem:[#allocation10 + $0x20] sm:$0xff] }
  0x62   :  { %1065 = vmatpush1.bf16.msra.mxu0 %v1064_v37  ;;  %v1106_v4 = vpack.c.bf16 %v814_v2, %v812_v1  ;;  %v818_v7 = vld [vmem:[#allocation10 + $0x38] sm:$0xff]  ;;  %v819_v16 = vld [vmem:[#allocation10 + $0x40] sm:$0xff] }
  0x63   :  { %1067 = vmatprep.subr.bf16.mxu0 %v1066_v38  ;;  %v1406_v38 = vshrl.u32 %v258_v35, 7  ;;  %v822_v13 = vld [vmem:[#allocation10 + $0x58] sm:$0xff]  ;;  %v823_v22 = vld [vmem:[#allocation10 + $0x60] sm:$0xff]  ;;  %v833_v35 = vld [vmem:[#allocation10 + $0xb0] sm:$0xff] }
  0x64   :  { %v826_v19 = vld [vmem:[#allocation10 + $0x78] sm:$0xff]  ;;  %v827_v28 = vld [vmem:[#allocation10 + $0x80] sm:$0xff] }
  0x65   :  { %v1409_v39 = vsub.s32 0, %v1406_v38  ;;  %v830_v25 = vld [vmem:[#allocation10 + $0x98] sm:$0xff]  ;;  %v851_v2 = vld [vmem:[#allocation10 + $0x140] sm:$0xff] }
  0x66   :  { %1069 = vmatpush1.bf16.msra.mxu0 %v1068_v45  ;;  %v834_v31 = vld [vmem:[#allocation10 + $0xb8] sm:$0xff] }
  0x67   :  { %1071 = vmatprep.subr.bf16.mxu0 %v1070_v46 }
  0x6a   :  { %1073 = vmatpush1.bf16.msra.mxu0 %v1072_v51 }
  0x6b   :  { %1075 = vmatprep.subr.bf16.mxu0 %v1074_v52 }
  0x6e   :  { %1077 = vmatpush1.bf16.msra.mxu0 %v1076_v57 }
  0x6f   :  { %1079 = vmatprep.subr.bf16.mxu0 %v1078_v58 }
  0x72   :  { %1081 = vmatpush1.bf16.msra.mxu0 %v1080_v63  ;;  %v418_v63 = vld [vmem:[#allocation4] sm:$0xff] }
  0x73   :  { %1083 = vmatprep.subr.bf16.mxu0 %v1082_v0 }
  0x76   :  { %1085 = vmatpush1.bf16.msra.mxu0 %v1084_v5  ;;  %v813_v5 = vld [vmem:[#allocation10 + $0x10] sm:$0xff] }
  0x77   :  { %1087 = vmatprep.subr.bf16.mxu0 %v1086_v6  ;;  %v816_v6 = vld [vmem:[#allocation10 + $0x28] sm:$0xff]  ;;  %v1108_v8 = vpack.c.bf16 %v813_v5, %v811_v3  ;;  %v853_v3 = vld [vmem:[#allocation10 + $0x150] sm:$0xff]  ;;  %v858_v5 = vld [vmem:[#allocation10 + $0x178] sm:$0xff] }
  0x78   :  { %v1110_v9 = vpack.c.bf16 %v818_v7, %v816_v6  ;;  %v1148_v6 = vpack.c.bf16 %v853_v3, %v851_v2 }
  0x7a   :  { %1089 = vmatpush1.bf16.msra.mxu0 %v1088_v11  ;;  %v817_v11 = vld [vmem:[#allocation10 + $0x30] sm:$0xff] }
  0x7b   :  { %1091 = vmatprep.subr.bf16.mxu0 %v1090_v12  ;;  %v820_v12 = vld [vmem:[#allocation10 + $0x48] sm:$0xff]  ;;  %v1112_v14 = vpack.c.bf16 %v817_v11, %v815_v10 }
  0x7c   :  { %v1114_v15 = vpack.c.bf16 %v822_v13, %v820_v12  ;;  %v855_v12 = vld [vmem:[#allocation10 + $0x160] sm:$0xff]  ;;  %v857_v13 = vld [vmem:[#allocation10 + $0x170] sm:$0xff] }
  0x7e   :  { %1093 = vmatpush1.bf16.msra.mxu0 %v1092_v17  ;;  %v821_v17 = vld [vmem:[#allocation10 + $0x50] sm:$0xff] }
  0x7f   :  { %1095 = vmatprep.subr.bf16.mxu0 %v1094_v18  ;;  %v824_v18 = vld [vmem:[#allocation10 + $0x68] sm:$0xff]  ;;  %v1116_v20 = vpack.c.bf16 %v821_v17, %v819_v16  ;;  %v1152_v16 = vpack.c.bf16 %v857_v13, %v855_v12  ;;  %v862_v17 = vld [vmem:[#allocation10 + $0x198] sm:$0xff] }
  0x80   :  { %v1118_v21 = vpack.c.bf16 %v826_v19, %v824_v18 }
  0x82   :  { %1097 = vmatpush1.bf16.msra.mxu0 %v1096_v23  ;;  %v825_v23 = vld [vmem:[#allocation10 + $0x70] sm:$0xff] }
  0x83   :  { %1099 = vmatprep.subr.bf16.mxu0 %v1098_v24  ;;  %v828_v24 = vld [vmem:[#allocation10 + $0x88] sm:$0xff]  ;;  %v1120_v26 = vpack.c.bf16 %v825_v23, %v823_v22 }
  0x84   :  { %v1122_v27 = vpack.c.bf16 %v830_v25, %v828_v24 }
  0x86   :  { %1101 = vmatpush1.bf16.msra.mxu0 %v1100_v29  ;;  %v829_v29 = vld [vmem:[#allocation10 + $0x90] sm:$0xff] }
  0x87   :  { %1103 = vmatprep.subr.bf16.mxu0 %v1102_v30  ;;  %v832_v30 = vld [vmem:[#allocation10 + $0xa8] sm:$0xff]  ;;  %v1124_v32 = vpack.c.bf16 %v829_v29, %v827_v28  ;;  %v859_v29 = vld [vmem:[#allocation10 + $0x180] sm:$0xff] }
  0x8a   :  { %1105 = vmatpush1.bf16.msra.mxu0 %v1104_v33  ;;  %v1126_v33 = vpack.c.bf16 %v834_v31, %v832_v30  ;;  %v861_v30 = vld [vmem:[#allocation10 + $0x190] sm:$0xff] }
  0x8b   :  { %1032 = vmatprep.subr.mxu0 %v1313_v47 }
  0x8d   :  { %215 = vmatmul.mubr.f32.vlgmr.msra.gmra.mrb[0].mxu0 %v1401_v41 }
  0x8e   :  { %1034 = vmatprep.mubr.msk.f32.mxu0 %vm1314_vm1, %v1313_v47 }
 0x160   :  { %v216_v34 = vpop.f32.mrb[0].mxu0 }
 0x161   :  { %v218_v36 = vpop.f32.mrb[1].mxu0 }
 0x162   :  { %v223_v37 = vcombine.low %v216_v34, %v218_v36  ;;  %v831_v34 = vld [vmem:[#allocation10 + $0xa0] sm:$0xff]  ;;  %v836_v36 = vld [vmem:[#allocation10 + $0xc8] sm:$0xff] }
 0x164   :  { %999 = vst.sshfl [vmem:[#allocation2] sm:$0x33 pattern:$0x76325410] %v223_v37  ;;  %v838_v37 = vld [vmem:[#allocation10 + $0xd8] sm:$0xff] }
 0x16b   :  { %v1000_v40 = vld.sshfl [vmem:[#allocation2] sm:$0x11 pattern:$0x75316420] }
 0x16c   :  { %v1004_v42 = vld.sshfl [vmem:[#allocation2 + $0x2] sm:$0x11 pattern:$0x75316420]  ;;  %v287_v43 = vrot.slane %v1000_v40, %v1409_v39  ;;  %v309_v44 = vcombine.high %v1000_v40, %v1000_v40  ;;  %246 = vst.msk [vmem:[#allocation3] sm:$0x1] %vm245_vm0, %v1000_v40  ;;  %v1128_v40 = vpack.c.bf16 %v833_v35, %v831_v34  ;;  %v1156_v34 = vpack.c.bf16 %v861_v30, %v859_v29 }
 0x16d   :  { %v349_v45 = vcombine.high %v1004_v42, %v1004_v42  ;;  %338 = vst.msk [vmem:[#allocation3 + $0x4] sm:$0x1] %vm245_vm0, %v1004_v42  ;;  %v353_v41 = vrot.slane %v1004_v42, %v1409_v39  ;;  %v1130_v42 = vpack.c.bf16 %v838_v37, %v836_v36  ;;  %v864_v35 = vld [vmem:[#allocation10 + $0x1a8] sm:$0xff]  ;;  %v866_v36 = vld [vmem:[#allocation10 + $0x1b8] sm:$0xff] }
 0x16e   :  { %292 = vrot.lane.b32.xlu1 %v287_v43, %s1310_s3  ;;  %266 = vrot.lane.b32.xlu0 %v287_v43, %s1311_s16  ;;  %247 = vst.msk [vmem:[#allocation3 + $0x8] sm:$0x1] %vm245_vm0, %v309_v44  ;;  %v317_v46 = vrot.slane %v309_v44, %v1409_v39  ;;  %v837_v44 = vld [vmem:[#allocation10 + $0xd0] sm:$0xff] }
 0x16f   :  { %339 = vst.msk [vmem:[#allocation3 + $0xc] sm:$0x1] %vm245_vm0, %v349_v45  ;;  %v357_v48 = vrot.slane %v349_v45, %v1409_v39  ;;  %v840_v45 = vld [vmem:[#allocation10 + $0xe8] sm:$0xff] }
 0x172   :  { %358 = vrot.lane.b32.xlu1 %v353_v41, %s1311_s16  ;;  %318 = vrot.lane.b32.xlu0 %v287_v43, %s1312_s17  ;;  %v835_v43 = vld [vmem:[#allocation10 + $0xc0] sm:$0xff] }
 0x176   :  { %320 = vrot.lane.b32.xlu1 %v317_v46, %s1312_s17  ;;  %268 = vrot.lane.b32.xlu0 %v317_v46, %s1311_s16 }
 0x17a   :  { %360 = vrot.lane.b32.xlu1 %v357_v48, %s1311_s16  ;;  %294 = vrot.lane.b32.xlu0 %v317_v46, %s1310_s3  ;;  %v1132_v46 = vpack.c.bf16 %v837_v44, %v835_v43  ;;  %v1158_v44 = vpack.c.bf16 %v866_v36, %v864_v35 }
 0x17e   :  { %412 = vrot.lane.b32.xlu1 %v357_v48, %s1312_s17  ;;  %386 = vrot.lane.b32.xlu0 %v357_v48, %s1310_s3  ;;  %v839_v48 = vld [vmem:[#allocation10 + $0xe0] sm:$0xff] }
 0x182   :  { %410 = vrot.lane.b32.xlu1 %v353_v41, %s1312_s17  ;;  %384 = vrot.lane.b32.xlu0 %v353_v41, %s1310_s3  ;;  %v842_v41 = vld [vmem:[#allocation10 + $0xf8] sm:$0xff] }
 0x183   :  { %v1134_v47 = vpack.c.bf16 %v842_v41, %v840_v45 }
 0x1e0   :  { %v293_v49 = vpop.permute.xlu1 %292  ;;  %v267_v50 = vpop.permute.xlu0 %266 }
 0x1e1   :  { %298 = vst.msk [vmem:[#allocation3 + $0x2] sm:$0x1] %vm245_vm0, %v293_v49  ;;  %272 = vst.msk [vmem:[#allocation3 + $0x1] sm:$0x1] %vm245_vm0, %v267_v50  ;;  %v841_v49 = vld [vmem:[#allocation10 + $0xf0] sm:$0xff]  ;;  %v844_v50 = vld [vmem:[#allocation10 + $0x108] sm:$0xff] }
 0x1e4   :  { %v359_v51 = vpop.permute.xlu1 %358  ;;  %v319_v52 = vpop.permute.xlu0 %318 }
 0x1e5   :  { %364 = vst.msk [vmem:[#allocation3 + $0x5] sm:$0x1] %vm245_vm0, %v359_v51  ;;  %324 = vst.msk [vmem:[#allocation3 + $0x3] sm:$0x1] %vm245_vm0, %v319_v52  ;;  %v846_v51 = vld [vmem:[#allocation10 + $0x118] sm:$0xff]  ;;  %v1136_v52 = vpack.c.bf16 %v841_v49, %v839_v48 }
 0x1e8   :  { %v321_v53 = vpop.permute.xlu1 %320  ;;  %v269_v54 = vpop.permute.xlu0 %268 }
 0x1e9   :  { %325 = vst.msk [vmem:[#allocation3 + $0xb] sm:$0x1] %vm245_vm0, %v321_v53  ;;  %273 = vst.msk [vmem:[#allocation3 + $0x9] sm:$0x1] %vm245_vm0, %v269_v54  ;;  %v1138_v53 = vpack.c.bf16 %v846_v51, %v844_v50  ;;  %v843_v54 = vld [vmem:[#allocation10 + $0x100] sm:$0xff] }
 0x1ec   :  { %v361_v55 = vpop.permute.xlu1 %360  ;;  %v295_v56 = vpop.permute.xlu0 %294 }
 0x1ed   :  { %365 = vst.msk [vmem:[#allocation3 + $0xd] sm:$0x1] %vm245_vm0, %v361_v55  ;;  %299 = vst.msk [vmem:[#allocation3 + $0xa] sm:$0x1] %vm245_vm0, %v295_v56  ;;  %v845_v55 = vld [vmem:[#allocation10 + $0x110] sm:$0xff]  ;;  %v848_v56 = vld [vmem:[#allocation10 + $0x128] sm:$0xff] }
 0x1f0   :  { %v413_v57 = vpop.permute.xlu1 %412  ;;  %v387_v58 = vpop.permute.xlu0 %386 }
 0x1f1   :  { %417 = vst.msk [vmem:[#allocation3 + $0xf] sm:$0x1] %vm245_vm0, %v413_v57  ;;  %391 = vst.msk [vmem:[#allocation3 + $0xe] sm:$0x1] %vm245_vm0, %v387_v58  ;;  %v850_v57 = vld [vmem:[#allocation10 + $0x138] sm:$0xff]  ;;  %v1140_v58 = vpack.c.bf16 %v845_v55, %v843_v54 }
 0x1f4   :  { %v411_v59 = vpop.permute.xlu1 %410  ;;  %v385_v60 = vpop.permute.xlu0 %384 }
 0x1f5   :  { %416 = vst.msk [vmem:[#allocation3 + $0x7] sm:$0x1] %vm245_vm0, %v411_v59  ;;  %390 = vst.msk [vmem:[#allocation3 + $0x6] sm:$0x1] %vm245_vm0, %v385_v60  ;;  %v1142_v59 = vpack.c.bf16 %v850_v57, %v848_v56  ;;  %v847_v60 = vld [vmem:[#allocation10 + $0x120] sm:$0xff] }
 0x1f8   :  { %v421_v62 = vld [vmem:[#allocation3 + $0x8] sm:$0xff] }
 0x1f9   :  { %1038 = vmatpush3.msra.mxu1 %v421_v62  ;;  %v852_v62 = vld [vmem:[#allocation10 + $0x148] sm:$0xff] }
 0x1fa   :  { %1040 = vmatmul.mubr.msk.f32.vlgmr.msra.gmra.mrb[0].mxu1 %vm422_vm2, %v419_v61  ;;  %1107 = vmatprep.subr.bf16.mxu1 %v1106_v4  ;;  %v849_v61 = vld [vmem:[#allocation10 + $0x130] sm:$0xff]  ;;  %v856_v4 = vld [vmem:[#allocation10 + $0x168] sm:$0xff] }
 0x1fb   :  { %1109 = vmatpush1.bf16.msra.mxu1 %v1108_v8  ;;  %v1150_v7 = vpack.c.bf16 %v858_v5, %v856_v4  ;;  %v867_v4 = vld [vmem:[#allocation10 + $0x1c0] sm:$0xff] }
 0x1fc   :  { %v420_v0 = vld [vmem:[#allocation3] sm:$0xff]  ;;  %1111 = vmatprep.subr.bf16.mxu1 %v1110_v9 }
 0x1fd   :  { %1033 = vmatpush3.msra.mxu0 %v420_v0  ;;  %v1144_v0 = vpack.c.bf16 %v849_v61, %v847_v60 }
 0x1fe   :  { %1035 = vmatmul.mubr.msk.f32.vlgmr.msra.gmra.mrb[2].mxu0 %vm422_vm2, %v418_v63  ;;  %v854_v63 = vld [vmem:[#allocation10 + $0x158] sm:$0xff] }
 0x1ff   :  { %1113 = vmatpush1.bf16.msra.mxu1 %v1112_v14  ;;  %v1146_v1 = vpack.c.bf16 %v854_v63, %v852_v62  ;;  %v860_v14 = vld [vmem:[#allocation10 + $0x188] sm:$0xff]  ;;  %v870_v63 = vld [vmem:[#allocation10 + $0x1d8] sm:$0xff] }
 0x200   :  { %1115 = vmatprep.subr.bf16.mxu1 %v1114_v15  ;;  %v1154_v19 = vpack.c.bf16 %v862_v17, %v860_v14  ;;  %v868_v62 = vld [vmem:[#allocation10 + $0x1c8] sm:$0xff]  ;;  %v874_v14 = vld [vmem:[#allocation10 + $0x1f8] sm:$0xff] }
 0x201   :  { %v1162_v3 = vpack.c.bf16 %v870_v63, %v868_v62 }
 0x203   :  { %1117 = vmatpush1.bf16.msra.mxu1 %v1116_v20 }
 0x204   :  { %1119 = vmatprep.subr.bf16.mxu1 %v1118_v21 }
 0x207   :  { %1121 = vmatpush1.bf16.msra.mxu1 %v1120_v26 }
 0x208   :  { %1123 = vmatprep.subr.bf16.mxu1 %v1122_v27 }
 0x20b   :  { %1125 = vmatpush1.bf16.msra.mxu1 %v1124_v32 }
 0x20c   :  { %1127 = vmatprep.subr.bf16.mxu1 %v1126_v33 }
 0x20f   :  { %1129 = vmatpush1.bf16.msra.mxu1 %v1128_v40 }
 0x210   :  { %1131 = vmatprep.subr.bf16.mxu1 %v1130_v42 }
 0x213   :  { %1133 = vmatpush1.bf16.msra.mxu1 %v1132_v46 }
 0x214   :  { %1135 = vmatprep.subr.bf16.mxu1 %v1134_v47 }
 0x217   :  { %1137 = vmatpush1.bf16.msra.mxu1 %v1136_v52 }
 0x218   :  { %1139 = vmatprep.subr.bf16.mxu1 %v1138_v53  ;;  %v863_v53 = vld [vmem:[#allocation10 + $0x1a0] sm:$0xff] }
 0x21b   :  { %1141 = vmatpush1.bf16.msra.mxu1 %v1140_v58  ;;  %v865_v58 = vld [vmem:[#allocation10 + $0x1b0] sm:$0xff] }
 0x21c   :  { %1143 = vmatprep.subr.bf16.mxu1 %v1142_v59  ;;  %v1160_v61 = vpack.c.bf16 %v865_v58, %v863_v53 }
 0x21f   :  { %1145 = vmatpush1.bf16.msra.mxu1 %v1144_v0 }
 0x220   :  { %1147 = vmatprep.subr.bf16.mxu1 %v1146_v1 }
 0x223   :  { %1149 = vmatpush1.bf16.msra.mxu1 %v1148_v6 }
 0x224   :  { %1151 = vmatprep.subr.bf16.mxu1 %v1150_v7  ;;  %v869_v7 = vld [vmem:[#allocation10 + $0x1d0] sm:$0xff] }
 0x225   :  { %v1164_v13 = vpack.c.bf16 %v869_v7, %v867_v4 }
 0x227   :  { %1153 = vmatpush1.bf16.msra.mxu1 %v1152_v16 }
 0x228   :  { %1155 = vmatprep.subr.bf16.mxu1 %v1154_v19  ;;  %v871_v19 = vld [vmem:[#allocation10 + $0x1e0] sm:$0xff] }
 0x22b   :  { %1157 = vmatpush1.bf16.msra.mxu1 %v1156_v34 }
 0x22c   :  { %1159 = vmatprep.subr.bf16.mxu1 %v1158_v44  ;;  %v875_v44 = vld [vmem:[%s1504_s4] sm:$0x3] }
 0x22f   :  { %1161 = vmatpush1.bf16.msra.mxu1 %v1160_v61 }
 0x230   :  { %1163 = vmatprep.subr.bf16.mxu1 %v1162_v3 }
 0x233   :  { %1165 = vmatpush1.bf16.msra.mxu1 %v1164_v13 }
 0x2cd   :  { %v565_v8 = vpop.f32.mrb[0].mxu1 }
 0x2ce   :  { %571 = vst.msk [vmem:[#allocation3 + $0x8] sm:$0xff] %vm569_vm3, %v565_v8  ;;  %v1041_v9 = vpop.f32.mrb[1].mxu1  ;;  %v872_v8 = vld [vmem:[#allocation10 + $0x1e8] sm:$0xff] }
 0x2d1   :  { %v492_v10 = vpop.f32.mrb[2].mxu0 }
 0x2d2   :  { %570 = vst.msk [vmem:[#allocation3] sm:$0xff] %vm569_vm3, %v492_v10  ;;  %v1036_v11 = vpop.f32.mrb[3].mxu0 }
 0x2d5   :  { %v1021_v15 = vld.sshfl [vmem:[#allocation3 + $0xd] sm:$0x1 pattern:$0x76325410] }
 0x2d6   :  { %v1011_v18 = vld.sshfl [vmem:[#allocation3 + $0x8] sm:$0x1 pattern:$0x76325410]  ;;  %v743_v22 = vrot.slane %v1021_v15, 7 }
 0x2d7   :  { %v594_v20 = vrot.slane %v1011_v18, 7  ;;  %v1019_v21 = vld.sshfl [vmem:[#allocation3 + $0xc] sm:$0x1 pattern:$0x76325410]  ;;  %v1166_v18 = vpack.c.bf16 %v874_v14, %v872_v8 }
 0x2d8   :  { %v716_v23 = vrot.slane %v1019_v21, 7  ;;  %v1013_v24 = vld.sshfl [vmem:[#allocation3 + $0x9] sm:$0x1 pattern:$0x76325410] }
 0x2d9   :  { %v1010_v25 = vld.sshfl [vmem:[#allocation3] sm:$0x1 pattern:$0x76325410]  ;;  %v626_v26 = vrot.slane %v1013_v24, 7  ;;  %1167 = vmatprep.subr.bf16.mxu1 %v1166_v18 }
 0x2da   :  { %v1018_v27 = vld.sshfl [vmem:[#allocation3 + $0x4] sm:$0x1 pattern:$0x76325410]  ;;  %v596_v28 = vsel %vm595_vm4, %v594_v20, %v1010_v25 }
 0x2db   :  { %v1020_v31 = vld.sshfl [vmem:[#allocation3 + $0x5] sm:$0x1 pattern:$0x76325410]  ;;  %v598_v32 = vsel %vm597_vm5, %v594_v20, %v596_v28  ;;  %v717_v33 = vsel %vm595_vm4, %v716_v23, %v1018_v27 }
 0x2dc   :  { %v744_v37 = vsel %vm595_vm4, %v743_v22, %v1020_v31  ;;  %v600_v40 = vsel %vm599_vm6, %v594_v20, %v598_v32  ;;  %v718_v42 = vsel %vm597_vm5, %v716_v23, %v717_v33  ;;  %v1012_v43 = vld.sshfl [vmem:[#allocation3 + $0x1] sm:$0x1 pattern:$0x76325410] }
 0x2dd   :  { %v745_v45 = vsel %vm597_vm5, %v743_v22, %v744_v37  ;;  %v602_v41 = vsel %vm601_vm7, %v594_v20, %v600_v40  ;;  %v719_v46 = vsel %vm599_vm6, %v716_v23, %v718_v42  ;;  %v627_v47 = vsel %vm595_vm4, %v626_v26, %v1012_v43  ;;  %v1022_v48 = vld.sshfl [vmem:[#allocation3 + $0x6] sm:$0x1 pattern:$0x76325410]  ;;  %v873_v20 = vld [vmem:[#allocation10 + $0x1f0] sm:$0xff] }
 0x2de   :  { %v746_v49 = vsel %vm599_vm6, %v743_v22, %v745_v45  ;;  %v720_v50 = vsel %vm601_vm7, %v716_v23, %v719_v46  ;;  %v628_v51 = vsel %vm597_vm5, %v626_v26, %v627_v47  ;;  %v1023_v52 = vld.sshfl [vmem:[#allocation3 + $0xe] sm:$0x1 pattern:$0x76325410]  ;;  %605 = vst.msk [vmem:[#allocation2] sm:$0x3] %vm604_vm8, %v602_v41  ;;  %v880_v41 = vrot.slane %v875_v44, %v1409_v39 }
 0x2df   :  { %v747_v54 = vsel %vm601_vm7, %v743_v22, %v746_v49  ;;  %v629_v55 = vsel %vm599_vm6, %v626_v26, %v628_v51  ;;  %v772_v56 = vrot.slane %v1023_v52, 7  ;;  %v1014_v57 = vld.sshfl [vmem:[#allocation3 + $0x2] sm:$0x1 pattern:$0x76325410]  ;;  %v883_v45 = vsub.s32 1, %v1406_v38 }
 0x2e0   :  { %722 = vst.msk [vmem:[#allocation2 + $0x2] sm:$0x3] %vm604_vm8, %v720_v50  ;;  %748 = vrot.lane.b32.xlu1 %v747_v54, %s1312_s17  ;;  %v630_v59 = vsel %vm601_vm7, %v626_v26, %v629_v55  ;;  %v1015_v60 = vld.sshfl [vmem:[#allocation3 + $0xa] sm:$0x1 pattern:$0x76325410]  ;;  %v1168_v26 = vpack.c.bf16 %v873_v20, %v871_v19 }
 0x2e1   :  { %631 = vrot.lane.b32.xlu0 %v630_v59, %s1312_s17  ;;  %v773_v0 = vsel %vm595_vm4, %v772_v56, %v1022_v48  ;;  %v656_v1 = vrot.slane %v1015_v60, 7  ;;  %v1024_v2 = vld.sshfl [vmem:[#allocation3 + $0x7] sm:$0x1 pattern:$0x76325410]  ;;  %v884_v46 = vrot.slane %v875_v44, %v883_v45 }
 0x2e2   :  { %v774_v5 = vsel %vm597_vm5, %v772_v56, %v773_v0  ;;  %v1025_v6 = vld.sshfl [vmem:[#allocation3 + $0xf] sm:$0x1 pattern:$0x76325410]  ;;  %1169 = vmatpush1.bf16.msra.mxu1 %v1168_v26 }
 0x2e3   :  { %v775_v9 = vsel %vm599_vm6, %v772_v56, %v774_v5  ;;  %v657_v10 = vsel %vm595_vm4, %v656_v1, %v1014_v57  ;;  %v801_v11 = vrot.slane %v1025_v6, 7  ;;  %v1016_v12 = vld.sshfl [vmem:[#allocation3 + $0x3] sm:$0x1 pattern:$0x76325410] }
 0x2e4   :  { %v776_v15 = vsel %vm601_vm7, %v772_v56, %v775_v9  ;;  %v658_v16 = vsel %vm597_vm5, %v656_v1, %v657_v10  ;;  %v1017_v17 = vld.sshfl [vmem:[#allocation3 + $0xb] sm:$0x1 pattern:$0x76325410] }
 0x2e5   :  { %777 = vrot.lane.b32.xlu1 %v776_v15, %s1310_s3  ;;  %v659_v21 = vsel %vm599_vm6, %v656_v1, %v658_v16  ;;  %v802_v22 = vsel %vm595_vm4, %v801_v11, %v1024_v2  ;;  %v686_v23 = vrot.slane %v1017_v17, 7 }
 0x2e6   :  { %v660_v24 = vsel %vm601_vm7, %v656_v1, %v659_v21  ;;  %v803_v25 = vsel %vm597_vm5, %v801_v11, %v802_v22 }
 0x2e7   :  { %661 = vrot.lane.b32.xlu0 %v660_v24, %s1310_s3  ;;  %v804_v27 = vsel %vm599_vm6, %v801_v11, %v803_v25  ;;  %v687_v28 = vsel %vm595_vm4, %v686_v23, %v1016_v12 }
 0x2e8   :  { %v805_v29 = vsel %vm601_vm7, %v801_v11, %v804_v27  ;;  %v688_v30 = vsel %vm597_vm5, %v686_v23, %v687_v28 }
 0x2e9   :  { %806 = vrot.lane.b32.xlu1 %v805_v29, %s1311_s16  ;;  %v689_v31 = vsel %vm599_vm6, %v686_v23, %v688_v30 }
 0x2ea   :  { %v690_v32 = vsel %vm601_vm7, %v686_v23, %v689_v31 }
 0x2eb   :  { %691 = vrot.lane.b32.xlu0 %v690_v32, %s1311_s16 }
 0x352   :  { %v749_v33 = vpop.permute.xlu1 %748 }
 0x353   :  { %751 = vst.msk [vmem:[#allocation2 + $0x2] sm:$0x3] %vm634_vm9, %v749_v33  ;;  %v632_v34 = vpop.permute.xlu0 %631 }
 0x354   :  { %635 = vst.msk [vmem:[#allocation2] sm:$0x3] %vm634_vm9, %v632_v34 }
 0x357   :  { %v778_v35 = vpop.permute.xlu1 %777 }
 0x358   :  { %780 = vst.msk [vmem:[#allocation2 + $0x2] sm:$0x3] %vm664_vm10, %v778_v35 }
 0x359   :  { %v662_v36 = vpop.permute.xlu0 %661 }
 0x35a   :  { %665 = vst.msk [vmem:[#allocation2] sm:$0x3] %vm664_vm10, %v662_v36 }
 0x35b   :  { %v807_v37 = vpop.permute.xlu1 %806 }
 0x35c   :  { %809 = vst.msk [vmem:[#allocation2 + $0x2] sm:$0x3] %vm694_vm11, %v807_v37 }
 0x35d   :  { %v692_v40 = vpop.permute.xlu0 %691 }
 0x35e   :  { %695 = vst.msk [vmem:[#allocation2] sm:$0x3] %vm694_vm11, %v692_v40 }
 0x365   :  { %v1026_v42 = vld.sshfl [vmem:[#allocation2] sm:$0x33 pattern:$0x76325410] }
 0x366   :  { %v895_v43 = vcombine.high %v1026_v42, %v1026_v42 }
 0x368   :  { %962 = vmatprep.mubr.f32.mxu1 %v895_v43 }
 0x369   :  { %963 = vmatmul.mubr.f32.vlgmr.msra.gmra.mrb[2].mxu1 %v1026_v42 }
 0x43c   :  { %v964_v47 = vpop.f32.mrb[2].mxu1 }
 0x43d   :  { %v965_v48 = vadd.f32 %v964_v47, %v880_v41  ;;  %v966_v49 = vpop.f32.mrb[3].mxu1 }
 0x43e   :  { %v967_v50 = vadd.f32 %v966_v49, %v884_v46 }
 0x440   :  { %v971_v51 = vcombine.low %v965_v48, %v967_v50 }
 0x442   :  { %1027 = vst.sshfl [vmem:[#allocation12] sm:$0x33 pattern:$0x76325410] %v971_v51 }
 0x443   :  { %1283 = shalt.err (!%p1280_p8)
}
 0x444   :  { %s1284_s25 = scalar_lea.hbm %s1505_s5, 64 }
 0x445   :  { %p1285_p9 = scmp.ne.s32.totalorder %s1505_s5, %s1284_s25  ;;  %p1288_p10 = scmp.lt.u32.totalorder %s1284_s25, %s1505_s5 }
 0x447   :  { %p1290_p11 = pnand %p1288_p10, %p1285_p9 }
 0x449   :  { %1293 = shalt.err (!%p1290_p11)
}
 0x44a   :  { %990 = dma.vmem_to_hbm [thread:$0]  %s988_s22, 64, %s1505_s5, [#allocation6]  }
 0x44b   :  { %1300 = dma.done.wait [#allocation6], 64  }
 0x44c   :  { %1301 = vsyncadd [#allocation6], 4294967232 }
 0x44d   :  { %994 = vsyncpa [#allocation5], 1 }
 0x44e   :  { %995 = vsyncpa [#allocation8], 1 }
 0x44f   :  { %996 = vsyncpa [#allocation11], 1 }
 0x450   :  { %997 = vsyncpa [#allocation6], 1 }

</bundles_post_ra>
